<compile_context>
chip_gen: v7x
topology: tpu7x:2x2x1
jax: 0.10.0
libtpu: 0.0.40
codegen_flags: <defaults>
</compile_context>

<pallas_src>
from functools import partial

import numpy as np
import jax
import jax.numpy as jnp
from jax import lax
from jax.experimental import pallas as pl
from jax.experimental.pallas import tpu as pltpu


# ----------------------------- small helpers (glue) -----------------------------

def _vec_root_s(x):
    # TODO(synk): VecRootS' definition is not part of the provided source; assumed to be the
    # elementwise "root-s" activation  x -> x * (1 + x^2)^(-1/4).
    return x * (1.0 + x * x) ** (-0.25)


def stack_av(a, v):
    """a: (..., chan), v: (..., chan, 3) -> (..., 4*chan), interleaved [a_c, v_cx, v_cy, v_cz]."""
    rest, chan = a.shape[:-1], a.shape[-1]
    return jnp.concatenate([a[..., None], v], axis=-1).reshape(*rest, 4 * chan)


def split_av(t):
    """Exactly mirrors the PyTorch split_av (first chan -> scalars, rest -> (chan, 3))."""
    rest, chan = t.shape[:-1], t.shape[-1] // 4
    return t[..., :chan], t[..., chan:].reshape(*rest, chan, 3)


# ----------------------------- Pallas proximity-attention kernel -----------------------------

def _proxattn_kernel(coef_ref, q_ref, k_ref, v_ref, pq_ref, pkT_ref, o_ref, *,
                     kv_resident: bool, tk: int):
    bh = pl.program_id(0)
    kk = pl.program_id(2)

    # Output block is VMEM-resident across the k (reduction) axis -> use it as the f32
    # accumulator directly (no scratch, no finalize copy).
    @pl.when(kk == 0)
    def _():
        o_ref[...] = jnp.zeros_like(o_ref)

    q = q_ref[0]        # (tq, D)  bf16
    pq = pq_ref[0]      # (tq, 3)  f32  fractional coords
    pkT = pkT_ref[0]    # (3, tk)  f32  fractional coords, lane-dense k axis

    if kv_resident:
        # Whole-head K/V live in VMEM (fetched once per bh); slice the current k tile.
        koff = pl.multiple_of(kk * tk, tk)
        k = k_ref[0, pl.ds(koff, tk), :]      # (tk, D)  bf16
        v = v_ref[0, pl.ds(koff, tk), :]      # (tk, Dp) bf16
    else:
        k = k_ref[0]                          # (tk, D)  bf16
        v = v_ref[0]                          # (tk, Dp) bf16

    # Hoisted SMEM scalar reads:  coef[bh, c] = -L_c^2 / r0^2
    base = bh * 3
    c0 = coef_ref[base]
    c1 = coef_ref[base + 1]
    c2 = coef_ref[base + 2]
    coefs = (c0, c1, c2)

    # Periodic minimum-image distance in fractional coordinates (divide-free, single-round wrap):
    #   wrap(dd) = dd - round(dd);   d2w = sum_c coef_c * wrap_c^2;   prox = exp(d2w)   (EUP)
    d2w = None
    for c in range(3):                                   # static unroll over xyz
        dd = pq[:, c:c + 1] - pkT[c:c + 1, :]            # (tq,1) - (1,tk) outer broadcast
        dd = dd - lax.round(dd, lax.RoundingMethod.TO_NEAREST_EVEN)
        term = (coefs[c] * dd) * dd
        d2w = term if d2w is None else d2w + term
    prox = jnp.exp(d2w)

    # TODO(synk): proxattn_periodic is an external CUDA/triton kernel not included in the source;
    # assumed semantics: O_i = sum_j exp(-d_ij^2 / r0^2) * (Q_i . K_j) * V_j  (no softmax; caller
    # divides by sqrt(nodes) afterwards, matching the torch module).
    scores = lax.dot_general(q, k, (((1,), (1,)), ((), ())),
                             preferred_element_type=jnp.float32) * prox

    # score @ V on the MXU with bf16 operands, f32 accumulate into the output block.
    o_ref[0] += jnp.dot(scores.astype(jnp.bfloat16), v,
                        preferred_element_type=jnp.float32)


def proxattn_periodic(Q, K, V, pos_q, pos_k, r0sq_bh, box, *,
                      max_tq=512, max_tk=256, kv_budget_bytes=8 << 20):
    BH, N, D = Q.shape
    box = jnp.asarray(box, jnp.float32).reshape(3)
    invbox = (1.0 / box).astype(jnp.float32)

    # Node axis padded to a multiple of 128 (lane-dense k tiles, no tile-size cliff).
    # Padded K rows are zero -> zero scores; padded positions are zero -> exp stays finite.
    Npad = ((N + 127) // 128) * 128
    # Only V and O are feature-padded (lane-dense, unmasked output stores); Q/K keep native D.
    Dp = ((D + 127) // 128) * 128

    if Npad != N:
        pad_n = ((0, 0), (0, Npad - N), (0, 0))
        Q, K, V = jnp.pad(Q, pad_n), jnp.pad(K, pad_n), jnp.pad(V, pad_n)
        pos_q, pos_k = jnp.pad(pos_q, pad_n), jnp.pad(pos_k, pad_n)
    if Dp != D:
        V = jnp.pad(V, ((0, 0), (0, 0), (0, Dp - D)))

    # bf16 MXU operands everywhere; accumulation stays f32.
    Q = Q.astype(jnp.bfloat16)
    K = K.astype(jnp.bfloat16)
    V = V.astype(jnp.bfloat16)

    # Fractional coordinates and folded per-(bh, axis) exponent coefficients.
    fq = (pos_q.astype(jnp.float32) * invbox)                        # (BH, Npad, 3)
    fkT = jnp.swapaxes(pos_k.astype(jnp.float32) * invbox, 1, 2)     # (BH, 3, Npad)
    coef = (-(box * box)[None, :] / r0sq_bh[:, None]).reshape(-1).astype(jnp.float32)  # (BH*3,)

    def pick(cap):
        if Npad <= cap:
            return Npad
        for t in (cap, 256, 128):
            if t <= cap and Npad % t == 0:
                return t
        return 128          # Npad is a multiple of 128, so this always divides
    tq = pick(max_tq)
    tk = pick(max_tk)
    # v7x has 2 TensorCores sharded over the "parallel" axes: make sure there are >= 2 steps.
    if BH * (Npad // tq) < 2 and Npad // 2 >= 64:
        tq = Npad // 2

    grid = (BH, Npad // tq, Npad // tk)

    # Whole-head-resident K/V when they fit a small VMEM budget (double-buffered bf16 bytes):
    # removes the (N/tq)x K/V HBM re-read amplification of the per-tile path.
    kv_resident = 4 * Npad * (D + Dp) <= kv_budget_bytes

    if kv_resident:
        k_spec = pl.BlockSpec((1, Npad, D), lambda b, qi, ki, c: (b, 0, 0))
        v_spec = pl.BlockSpec((1, Npad, Dp), lambda b, qi, ki, c: (b, 0, 0))
    else:
        k_spec = pl.BlockSpec((1, tk, D), lambda b, qi, ki, c: (b, ki, 0))
        v_spec = pl.BlockSpec((1, tk, Dp), lambda b, qi, ki, c: (b, ki, 0))

    out = pl.pallas_call(
        partial(_proxattn_kernel, kv_resident=kv_resident, tk=tk),
        out_shape=jax.ShapeDtypeStruct((BH, Npad, Dp), jnp.float32),
        grid_spec=pltpu.PrefetchScalarGridSpec(
            num_scalar_prefetch=1,              # coef lands in SMEM
            grid=grid,
            in_specs=[
                pl.BlockSpec((1, tq, D), lambda b, qi, ki, c: (b, qi, 0)),    # Q  (bf16)
                k_spec,                                                       # K  (bf16)
                v_spec,                                                       # V  (bf16)
                pl.BlockSpec((1, tq, 3), lambda b, qi, ki, c: (b, qi, 0)),    # frac pos_q
                pl.BlockSpec((1, 3, tk), lambda b, qi, ki, c: (b, 0, ki)),    # frac pos_k^T
            ],
            out_specs=pl.BlockSpec((1, tq, Dp), lambda b, qi, ki, c: (b, qi, 0)),
        ),
        compiler_params=pltpu.CompilerParams(
            dimension_semantics=("parallel", "parallel", "arbitrary")),
    )(coef, Q, K, V, fq, fkT)

    return out[:, :N, :D]


# ----------------------------- module: parameters + forward -----------------------------

def init_params(key, r0_list, adim, vdim, chan):
    H = len(r0_list)
    keys = jax.random.split(key, 8)

    def init(k, shape):          # normal with std = fan_in^{-1/2}  (scale = 1)
        fan_in = shape[1]
        return (fan_in ** -0.5) * jax.random.normal(k, shape, jnp.float32)

    return dict(
        W_aq=init(keys[0], (H, chan, adim)),
        W_vq=init(keys[1], (H, chan, vdim)),
        W_ak=init(keys[2], (H, chan, adim)),
        W_vk=init(keys[3], (H, chan, vdim)),
        W_av=init(keys[4], (H, chan, adim)),
        W_vv=init(keys[5], (H, chan, vdim)),
        W_ao=init(keys[6], (H, adim, chan)),
        W_vo=init(keys[7], (H, vdim, chan)),
        r0sq=jnp.asarray(r0_list, jnp.float32) ** 2,
    )


def proximity_flash_attention_periodic(params, ax, vx, pos_k, pos_q, box, *,
                                       max_tq=512, max_tk=256, kv_budget_bytes=8 << 20):
    batch, nodes, adim = ax.shape
    H, chan, _ = params['W_aq'].shape
    D = 4 * chan

    def project(Wa, Wv):
        a = jnp.einsum('hij,bnj->bhni', Wa, ax)        # (B, H, N, chan)
        v = jnp.einsum('hij,bnjv->bhniv', Wv, vx)      # (B, H, N, chan, 3)
        return stack_av(a, v).reshape(batch * H, nodes, D)

    Q = _vec_root_s(project(params['W_aq'], params['W_vq']))
    K = _vec_root_s(project(params['W_ak'], params['W_vk']))
    V = project(params['W_av'], params['W_vv'])

    r0sq_bh = jnp.tile(params['r0sq'][None, :], (batch, 1)).reshape(batch * H)

    O = proxattn_periodic(
        Q, K, V,
        pos_q.reshape(batch * H, nodes, 3).astype(jnp.float32),
        pos_k.reshape(batch * H, nodes, 3).astype(jnp.float32),
        r0sq_bh, box,
        max_tq=max_tq, max_tk=max_tk, kv_budget_bytes=kv_budget_bytes)
    O = O / (nodes ** 0.5)

    ay, vy = split_av(O)
    ay = ay.reshape(batch, H, nodes, chan)
    vy = vy.reshape(batch, H, nodes, chan, 3)
    ay = jnp.einsum('hji,bhni->bnj', params['W_ao'], ay)        # (B, N, adim)
    vy = jnp.einsum('hji,bhniv->bnjv', params['W_vo'], vy)      # (B, N, vdim, 3)
    return ay, vy


# ----------------------------- float64 numpy reference -----------------------------

def _reference_forward(params, ax, vx, pos_k, pos_q, box):
    p = {k: np.asarray(v, np.float64) for k, v in params.items()}
    ax64 = np.asarray(ax, np.float64)
    vx64 = np.asarray(vx, np.float64)
    batch, nodes, adim = ax64.shape
    H, chan, _ = p['W_aq'].shape

    def stack(a, v):
        return np.concatenate([a[..., None], v], axis=-1).reshape(*a.shape[:-1], 4 * chan)

    def actv(x):
        return x * (1.0 + x * x) ** (-0.25)

    def proj(Wa, Wv):
        a = np.einsum('hij,bnj->bhni', Wa, ax64)
        v = np.einsum('hij,bnjv->bhniv', Wv, vx64)
        return stack(a, v).reshape(batch * H, nodes, 4 * chan)

    Q = actv(proj(p['W_aq'], p['W_vq']))
    K = actv(proj(p['W_ak'], p['W_vk']))
    V = proj(p['W_av'], p['W_vv'])

    pq = np.asarray(pos_q, np.float64).reshape(batch * H, nodes, 3)
    pk = np.asarray(pos_k, np.float64).reshape(batch * H, nodes, 3)
    box64 = np.asarray(box, np.float64)
    d = pq[:, :, None, :] - pk[:, None, :, :]
    d = d - box64 * np.round(d / box64)          # minimum-image
    d2 = (d * d).sum(-1)

    r0sq = np.tile(p['r0sq'][None, :], (batch, 1)).reshape(batch * H)
    prox = np.exp(-d2 / r0sq[:, None, None])
    scores = np.einsum('bid,bjd->bij', Q, K) * prox
    O = np.einsum('bij,bjd->bid', scores, V) / np.sqrt(nodes)

    ay = O[..., :chan].reshape(batch, H, nodes, chan)
    vy = O[..., chan:].reshape(batch, H, nodes, chan, 3)
    ay = np.einsum('hji,bhni->bnj', p['W_ao'], ay)
    vy = np.einsum('hji,bhniv->bnjv', p['W_vo'], vy)
    return ay, vy


# ----------------------------- main -----------------------------

if __name__ == "__main__":
    key = jax.random.PRNGKey(0)
    r0_list = [1.0, 2.0]                     # H = 2 heads
    H = len(r0_list)
    box = jnp.asarray([6.0, 6.0, 6.0], jnp.float32)

    def run_case(case_key, batch, nodes, adim, vdim, chan, **kw):
        kp, kax, kvx, kpk, kpq = jax.random.split(case_key, 5)
        params = init_params(kp, r0_list, adim, vdim, chan)
        ax = jax.random.normal(kax, (batch, nodes, adim), jnp.float32)
        vx = jax.random.normal(kvx, (batch, nodes, vdim, 3), jnp.float32)
        pos_k = jax.random.uniform(kpk, (batch, H, nodes, 3), jnp.float32) * box
        pos_q = jax.random.uniform(kpq, (batch, H, nodes, 3), jnp.float32) * box

        fwd = jax.jit(partial(proximity_flash_attention_periodic, **kw))
        ay, vy = jax.block_until_ready(fwd(params, ax, vx, pos_k, pos_q, box))

        assert ay.shape == (batch, nodes, adim)
        assert vy.shape == (batch, nodes, vdim, 3)

        ay_ref, vy_ref = _reference_forward(params, ax, vx, pos_k, pos_q, box)
        # Tolerance accounts for bf16 Q/K/V/scores MXU operands (f32 accumulation).
        np.testing.assert_allclose(np.asarray(ay), ay_ref, rtol=5e-2, atol=5e-2)
        np.testing.assert_allclose(np.asarray(vy), vy_ref, rtol=5e-2, atol=5e-2)

    k1, k2, k3 = jax.random.split(key, 3)
    # small N: whole (padded) node axis in one tile, single grid step per head
    run_case(k1, batch=2, nodes=32, adim=8, vdim=8, chan=8)
    # non-multiple-of-128 N with forced 128-tiles: exercises N padding, the k-axis
    # accumulation path and the resident-K/V dynamic-slice path
    run_case(k2, batch=1, nodes=200, adim=8, vdim=8, chan=8, max_tq=128, max_tk=128)
    # same size but forcing the per-tile (non-resident) K/V path
    run_case(k3, batch=1, nodes=256, adim=8, vdim=8, chan=8, max_tq=128, max_tk=128,
             kv_budget_bytes=0)
    print("KERNEL_OK")
</pallas_src>

<mosaic_0001>
module attributes {stable_mosaic.version = 11 : i64} {
  func.func @_proxattn_kernel(%arg0: i32, %arg1: i32, %arg2: i32, %arg3: memref<12xf32, #tpu.memory_space<smem>>, %arg4: memref<1x128x32xbf16, #tpu.memory_space<vmem>>, %arg5: memref<1x128x32xbf16, #tpu.memory_space<vmem>>, %arg6: memref<1x128x128xbf16, #tpu.memory_space<vmem>>, %arg7: memref<1x128x3xf32, #tpu.memory_space<vmem>>, %arg8: memref<1x3x128xf32, #tpu.memory_space<vmem>>, %arg9: memref<1x128x128xf32, #tpu.memory_space<vmem>>) attributes {dimension_semantics = [#tpu.dimension_semantics<parallel>, #tpu.dimension_semantics<parallel>, #tpu.dimension_semantics<arbitrary>], iteration_bounds = array<i64: 4, 1, 1>, scalar_prefetch = 1 : i64, scratch_operands = 0 : i64, tpu.core_type = #tpu.core_type<tc>, window_params = [{transform_indices = @transform_0, window_bounds = array<i64: 1, 128, 32>}, {transform_indices = @transform_1, window_bounds = array<i64: 1, 128, 32>}, {transform_indices = @transform_2, window_bounds = array<i64: 1, 128, 128>}, {transform_indices = @transform_3, window_bounds = array<i64: 1, 128, 3>}, {transform_indices = @transform_4, window_bounds = array<i64: 1, 3, 128>}, {transform_indices = @transform_5, window_bounds = array<i64: 1, 128, 128>}]} {
    %c0_i32 = arith.constant 0 : i32
    %0 = arith.cmpi eq, %arg2, %c0_i32 : i32
    %1 = arith.extui %0 : i1 to i32
    %c0_i32_0 = arith.constant 0 : i32
    %2 = arith.cmpi ne, %1, %c0_i32_0 : i32
    scf.if %2 {
      %cst_20 = arith.constant 0.000000e+00 : f32
      %69 = vector.broadcast %cst_20 : f32 to vector<1x128x128xf32>
      %c0_21 = arith.constant 0 : index
      %c0_22 = arith.constant 0 : index
      %c0_23 = arith.constant 0 : index
      %70 = vector.load %arg9[%c0_21, %c0_22, %c0_23] : memref<1x128x128xf32, #tpu.memory_space<vmem>>, vector<1x128x128xf32>
      tpu.vector_store %arg9[%c0_21, %c0_22, %c0_23], %69 {strides = array<i32>} : memref<1x128x128xf32, #tpu.memory_space<vmem>>, vector<1x128x128xf32>,
    } else {
    }
    %c0 = arith.constant 0 : index
    %c0_1 = arith.constant 0 : index
    %c0_2 = arith.constant 0 : index
    %3 = vector.load %arg4[%c0, %c0_1, %c0_2] : memref<1x128x32xbf16, #tpu.memory_space<vmem>>, vector<1x128x32xbf16>
    %4 = vector.shape_cast %3 : vector<1x128x32xbf16> to vector<128x32xbf16>
    %c0_3 = arith.constant 0 : index
    %c0_4 = arith.constant 0 : index
    %c0_5 = arith.constant 0 : index
    %5 = vector.load %arg7[%c0_3, %c0_4, %c0_5] : memref<1x128x3xf32, #tpu.memory_space<vmem>>, vector<1x128x3xf32>
    %6 = vector.shape_cast %5 : vector<1x128x3xf32> to vector<128x3xf32>
    %c0_6 = arith.constant 0 : index
    %c0_7 = arith.constant 0 : index
    %c0_8 = arith.constant 0 : index
    %7 = vector.load %arg8[%c0_6, %c0_7, %c0_8] : memref<1x3x128xf32, #tpu.memory_space<vmem>>, vector<1x3x128xf32>
    %8 = vector.shape_cast %7 : vector<1x3x128xf32> to vector<3x128xf32>
    %c128_i32 = arith.constant 128 : i32
    %9 = arith.muli %arg2, %c128_i32 : i32
    %10 = tpu.assume_multiple %9, 128 : i32
    %c0_9 = arith.constant 0 : index
    %11 = arith.index_cast %10 : i32 to index
    %c0_10 = arith.constant 0 : index
    %12 = vector.load %arg5[%c0_9, %11, %c0_10] : memref<1x128x32xbf16, #tpu.memory_space<vmem>>, vector<1x128x32xbf16>
    %13 = vector.shape_cast %12 : vector<1x128x32xbf16> to vector<128x32xbf16>
    %c0_11 = arith.constant 0 : index
    %14 = arith.index_cast %10 : i32 to index
    %c0_12 = arith.constant 0 : index
    %15 = vector.load %arg6[%c0_11, %14, %c0_12] : memref<1x128x128xbf16, #tpu.memory_space<vmem>>, vector<1x128x128xbf16>
    %16 = vector.shape_cast %15 : vector<1x128x128xbf16> to vector<128x128xbf16>
    %c3_i32 = arith.constant 3 : i32
    %17 = arith.muli %arg0, %c3_i32 : i32
    %18 = arith.index_cast %17 : i32 to index
    %19 = memref.load %arg3[%18] : memref<12xf32, #tpu.memory_space<smem>>
    %c1_i32 = arith.constant 1 : i32
    %20 = arith.addi %17, %c1_i32 : i32
    %21 = arith.index_cast %20 : i32 to index
    %22 = memref.load %arg3[%21] : memref<12xf32, #tpu.memory_space<smem>>
    %c2_i32 = arith.constant 2 : i32
    %23 = arith.addi %17, %c2_i32 : i32
    %24 = arith.index_cast %23 : i32 to index
    %25 = memref.load %arg3[%24] : memref<12xf32, #tpu.memory_space<smem>>
    %26 = vector.extract_strided_slice %6 {offsets = [0, 0], sizes = [128, 1], strides = [1, 1]} : vector<128x3xf32> to vector<128x1xf32>
    %27 = vector.extract_strided_slice %8 {offsets = [0, 0], sizes = [1, 128], strides = [1, 1]} : vector<3x128xf32> to vector<1x128xf32>
    %28 = vector.broadcast %26 : vector<128x1xf32> to vector<128x128xf32>
    %29 = vector.broadcast %27 : vector<1x128xf32> to vector<128x128xf32>
    %30 = arith.subf %28, %29 : vector<128x128xf32>
    %31 = math.roundeven %30 : vector<128x128xf32>
    %32 = arith.subf %30, %31 : vector<128x128xf32>
    %33 = vector.broadcast %19 : f32 to vector<128x128xf32>
    %34 = arith.mulf %33, %32 : vector<128x128xf32>
    %35 = arith.mulf %34, %32 : vector<128x128xf32>
    %36 = vector.extract_strided_slice %6 {offsets = [0, 1], sizes = [128, 1], strides = [1, 1]} : vector<128x3xf32> to vector<128x1xf32>
    %37 = vector.extract_strided_slice %8 {offsets = [1, 0], sizes = [1, 128], strides = [1, 1]} : vector<3x128xf32> to vector<1x128xf32>
    %38 = vector.broadcast %36 : vector<128x1xf32> to vector<128x128xf32>
    %39 = vector.broadcast %37 : vector<1x128xf32> to vector<128x128xf32>
    %40 = arith.subf %38, %39 : vector<128x128xf32>
    %41 = math.roundeven %40 : vector<128x128xf32>
    %42 = arith.subf %40, %41 : vector<128x128xf32>
    %43 = vector.broadcast %22 : f32 to vector<128x128xf32>
    %44 = arith.mulf %43, %42 : vector<128x128xf32>
    %45 = arith.mulf %44, %42 : vector<128x128xf32>
    %46 = arith.addf %35, %45 : vector<128x128xf32>
    %47 = vector.extract_strided_slice %6 {offsets = [0, 2], sizes = [128, 1], strides = [1, 1]} : vector<128x3xf32> to vector<128x1xf32>
    %48 = vector.extract_strided_slice %8 {offsets = [2, 0], sizes = [1, 128], strides = [1, 1]} : vector<3x128xf32> to vector<1x128xf32>
    %49 = vector.broadcast %47 : vector<128x1xf32> to vector<128x128xf32>
    %50 = vector.broadcast %48 : vector<1x128xf32> to vector<128x128xf32>
    %51 = arith.subf %49, %50 : vector<128x128xf32>
    %52 = math.roundeven %51 : vector<128x128xf32>
    %53 = arith.subf %51, %52 : vector<128x128xf32>
    %54 = vector.broadcast %25 : f32 to vector<128x128xf32>
    %55 = arith.mulf %54, %53 : vector<128x128xf32>
    %56 = arith.mulf %55, %53 : vector<128x128xf32>
    %57 = arith.addf %46, %56 : vector<128x128xf32>
    %58 = math.exp %57 : vector<128x128xf32>
    %cst = arith.constant dense<0.000000e+00> : vector<128x128xf32>
    %59 = tpu.matmul %4, %13, %cst {dimension_numbers = #tpu.dot_dimension_numbers<[1], [1], [0], [0], [0, 0, 1, 0], [], []>} : vector<128x32xbf16>, vector<128x32xbf16>, vector<128x128xf32> -> vector<128x128xf32>
    %60 = arith.mulf %59, %58 : vector<128x128xf32>
    %c0_13 = arith.constant 0 : index
    %c0_14 = arith.constant 0 : index
    %c0_15 = arith.constant 0 : index
    %61 = vector.load %arg9[%c0_13, %c0_14, %c0_15] : memref<1x128x128xf32, #tpu.memory_space<vmem>>, vector<1x128x128xf32>
    %62 = vector.shape_cast %61 : vector<1x128x128xf32> to vector<128x128xf32>
    %63 = arith.truncf %60 : vector<128x128xf32> to vector<128x128xbf16>
    %cst_16 = arith.constant dense<0.000000e+00> : vector<128x128xf32>
    %64 = tpu.matmul %63, %16, %cst_16 {dimension_numbers = #tpu.dot_dimension_numbers<[1], [0], [0], [1], [0, 0, 1, 1], [], []>} : vector<128x128xbf16>, vector<128x128xbf16>, vector<128x128xf32> -> vector<128x128xf32>
    %65 = arith.addf %62, %64 : vector<128x128xf32>
    %c0_17 = arith.constant 0 : index
    %c0_18 = arith.constant 0 : index
    %c0_19 = arith.constant 0 : index
    %66 = vector.load %arg9[%c0_17, %c0_18, %c0_19] : memref<1x128x128xf32, #tpu.memory_space<vmem>>, vector<1x128x128xf32>
    %67 = vector.shape_cast %66 : vector<1x128x128xf32> to vector<128x128xf32>
    %68 = vector.shape_cast %65 : vector<128x128xf32> to vector<1x128x128xf32>
    tpu.vector_store %arg9[%c0_17, %c0_18, %c0_19], %68 {strides = array<i32>} : memref<1x128x128xf32, #tpu.memory_space<vmem>>, vector<1x128x128xf32>,
    return
  }
  func.func @transform_0(%arg0: i32, %arg1: i32, %arg2: i32, %arg3: memref<12xf32, #tpu.memory_space<smem>>) -> (i32, i32, i32) {
    %c0_i32 = arith.constant 0 : i32
    %c0_i32_0 = arith.constant 0 : i32
    return %arg0, %arg1, %c0_i32 : i32, i32, i32
  }
  func.func @transform_1(%arg0: i32, %arg1: i32, %arg2: i32, %arg3: memref<12xf32, #tpu.memory_space<smem>>) -> (i32, i32, i32) {
    %c0_i32 = arith.constant 0 : i32
    %c0_i32_0 = arith.constant 0 : i32
    %c0_i32_1 = arith.constant 0 : i32
    return %arg0, %c0_i32, %c0_i32_0 : i32, i32, i32
  }
  func.func @transform_2(%arg0: i32, %arg1: i32, %arg2: i32, %arg3: memref<12xf32, #tpu.memory_space<smem>>) -> (i32, i32, i32) {
    %c0_i32 = arith.constant 0 : i32
    %c0_i32_0 = arith.constant 0 : i32
    %c0_i32_1 = arith.constant 0 : i32
    return %arg0, %c0_i32, %c0_i32_0 : i32, i32, i32
  }
  func.func @transform_3(%arg0: i32, %arg1: i32, %arg2: i32, %arg3: memref<12xf32, #tpu.memory_space<smem>>) -> (i32, i32, i32) {
    %c0_i32 = arith.constant 0 : i32
    %c0_i32_0 = arith.constant 0 : i32
    return %arg0, %arg1, %c0_i32 : i32, i32, i32
  }
  func.func @transform_4(%arg0: i32, %arg1: i32, %arg2: i32, %arg3: memref<12xf32, #tpu.memory_space<smem>>) -> (i32, i32, i32) {
    %c0_i32 = arith.constant 0 : i32
    %c0_i32_0 = arith.constant 0 : i32
    return %arg0, %c0_i32, %arg2 : i32, i32, i32
  }
  func.func @transform_5(%arg0: i32, %arg1: i32, %arg2: i32, %arg3: memref<12xf32, #tpu.memory_space<smem>>) -> (i32, i32, i32) {
    %c0_i32 = arith.constant 0 : i32
    %c0_i32_0 = arith.constant 0 : i32
    return %arg0, %arg1, %c0_i32 : i32, i32, i32
  }
}

</mosaic_0001>

<bundles_post_ra>
// kernel: tile.6
= control target key start
LH: loop header
LB: loop body
LE: loop exit
PB: predicated region body
PF: predicated region fallthrough
CT: control target
= control target key end

     0   :  { %s22_s0 = inlined_call_operand.vmem [shape: f32[2], index: 0, kind: input, shape index: {}]   ;;  %s23_s1 = inlined_call_operand.vmem [shape: f32[2,1,1,2], index: 1, kind: output, shape index: {}]  }
   0x1   :  { %v4_v0 = vld [vmem:[%s22_s0] ss:$0 sm:$0xff] }
   0x2   :  { %5 = vst [vmem:[%s23_s1] sm:$0x3] %v4_v0 }

// kernel: div.16
= control target key start
LH: loop header
LB: loop body
LE: loop exit
PB: predicated region body
PF: predicated region fallthrough
CT: control target
= control target key end

     0   :  { %vm7_vm0 = vcmask 15360   ;;  %vm13_vm1 = vcmask 31760   ;;  %s39_s0 = inlined_call_operand.vmem [shape: f32[2,1,1,2], index: 0, kind: input, shape index: {}]   ;;  %s40_s1 = inlined_call_operand.vmem [shape: f32[4], index: 1, kind: output, shape index: {}]  }
   0x1   :  { %v4_v0 = vld [vmem:[%s39_s0] sm:$0x3]  ;;  %s22_s0 = smov 2  }
   0x2   :  { %5 = vst [vmem:[#allocation1] sm:$0x3] %v4_v0 }
   0x9   :  { %v10_v1 = vld [vmem:[#allocation1 + $0x1] sm:$0x1]   ;;  %v6_v2 = vld [vmem:[#allocation1] sm:$0x1]  }
   0xa   :  { %11 = vrot.lane.b32.xlu0 %v10_v1, %s22_s0  ;;  %8 = vst.msk [vmem:[#allocation0] sm:$0x1] %vm7_vm0, %v6_v2  }
  0x7c   :  { %v12_v3 = vpop.permute.xlu0 %11  }
  0x7d   :  { %14 = vst.msk [vmem:[#allocation0] sm:$0x1] %vm13_vm1, %v12_v3  }
  0x84   :  { %v18_v4 = vld [vmem:[#allocation0] sm:$0x1] }
  0x85   :  { %20 = vst [vmem:[%s40_s1] sm:$0x1] %v18_v4 }

// kernel: proximity_flash_attention_periodic.1
= control target key start
LH: loop header
LB: loop body
LE: loop exit
PB: predicated region body
PF: predicated region fallthrough
CT: control target
= control target key end

     0   :  { %s2422_s0 = inlined_call_operand.vmem [shape: f32[12], index: 0, kind: input, shape index: {}]   ;;  %s2423_s1 = inlined_call_operand.vmem [shape: bf16[4,128,32], index: 1, kind: input, shape index: {}]   ;;  %s2424_s2 = inlined_call_operand.vmem [shape: bf16[4,128,32], index: 2, kind: input, shape index: {}]   ;;  %s2425_s3 = inlined_call_operand.vmem [shape: bf16[4,128,128], index: 3, kind: input, shape index: {}]   ;;  %s2426_s4 = inlined_call_operand.vmem [shape: f32[4,128,3], index: 4, kind: input, shape index: {}]   ;;  %s2427_s5 = inlined_call_operand.vmem [shape: f32[4,3,128], index: 5, kind: input, shape index: {}]   ;;  %s2428_s6 = inlined_call_operand.vmem [shape: f32[4,128,128], index: 6, kind: output, shape index: {}]  }
   0x1   :  { %s11_s23 = sshll.u32 %s2422_s0, 4  ;;  %s12_s23 = int_to_ptr.vmem [resolvable:$true] %s11_s23 }
   0x2   :  { %s1917_s24 = scalar_lea.vmem %s12_s23, 16  ;;  %p1922_p1 = scmp.lt.s32.totalorder %s12_s23, %s12_s23 }
   0x3   :  { %p1918_p0 = scmp.ne.s32.totalorder %s12_s23, %s1917_s24  ;;  %p1923_p2 = scmp.lt.s32.totalorder %s1917_s24, %s1917_s24 }
   0x5   :  { %p1924_p3 = por %p1923_p2, %p1922_p1 }
   0x7   :  { %p1925_p4 = pnand %p1924_p3, %p1918_p0 }
   0x9   :  { %1928 = shalt.err (!%p1925_p4)  }
   0xa   :  { %s1955_s25 = smov [#allocation3]  }
   0xb   :  { %14 = dma.vmem_to_smem %s12_s23, 16, %s1955_s25, [#allocation2] }
   0xc   :  { %1941 = dma.done.wait [#allocation2], 16 }
   0xd   :  { %1942 = vsyncadd [#allocation2], 4294967280 }
   0xe   :  { %16 = sfence }
   0xf   :  { %s1997_s26 = smov 0   ;;  %s1999_s27 = smov 0  }
  0x10   :  { %s2001_s28 = smov 0  }
  0x11 LB: > { %s41_s0 = sadd.s32 1, %s1949_s27  ;;  %p1606_p5 = scmp.ge.s32.totalorder %s1953_s28, 1  ;;  %s1953_s28 = sphi %s2001_s28, %s22_s28   ;;  %s1949_s27 = sphi %s1999_s27, %s2430_s27   ;;  %s1945_s26 = sphi %s1997_s26, %s2429_s26  }
  0x12   : > { %p43_p6 = scmp.ge.s32.totalorder %s41_s0, 4  ;;  %p273_p7 = scmp.lt.s32.totalorder %s1953_s28, 5 }
  0x14   : > { %s2432_s0 = smov (%p43_p6, %s41_s0), 0  ;;  %p274_p8 = pnand %p1606_p5, %p273_p7 }
  0x15   : > { %p336_p9 = scmp.lt.s32.totalorder (!%p274_p8), %s1945_s26, 3  ;;  %v1956_v0 = vmov (!%p274_p8), 2   ;;  %v1957_v1 = vmov (!%p274_p8), 1   ;;  %vm1088_vm0 = vcmask (!%p274_p8), 261120   ;;  %v1958_v11 = vmov (!%p274_p8), 0   ;;  %s2158_s24 = smul.u32 (!%p274_p8), 3, %s1945_s26 }
  0x16   : > { %277 = sbr.rel (%p274_p8) target bundleno = 560 (0x230), region = 40  ;;  %1842 = vset.pattern.permute.xlu0 (!%p274_p8), %v1956_v0  ;;  %1838 = vset.pattern.permute.xlu1 (!%p274_p8), %v1957_v1  ;;  %v561_v43 = vlaneseq (!%p274_p8) }
  0x17   : > { %s477_s25 = sadd.s32 (!%p274_p8), 1, %s2158_s24  ;;  %s476_s7 = sld [smem:[#allocation3 + %s2158_s24]] (!%p274_p8) }
  0x18   : > { %v562_v44 = vshrl.u32 (!%p274_p8), %v561_v43, 7  ;;  %s479_s8 = sadd.s32 (!%p274_p8), 2, %s2158_s24 }
  0x1a   : > { %v712_v45 = vsub.s32 (!%p274_p8), 1, %v562_v44  ;;  %v563_v54 = vsub.s32 (!%p274_p8), 0, %v562_v44  ;;  %v877_v58 = vsub.s32 (!%p274_p8), 2, %v562_v44 }
  0x1d   : > { %s2021_s29 = scalar_select %p336_p9, %s1945_s26, 3 }
  0x1e   : > { %s478_s26 = sld [smem:[#allocation3 + %s477_s25]] }
  0x1f   : > { %s1655_s30 = sshll.u32 %s2021_s29, 7  ;;  %s2034_s10 = sshll.u32 %s2021_s29, 6 }
  0x20   : > { %s2029_s9 = scalar_lea.vmem %s2426_s4, %s1655_s30  ;;  %s2040_s13 = scalar_lea.vmem %s2424_s2, %s2034_s10 }
  0x21   : > { %v420_v2 = vld [vmem:[%s2029_s9 + $0x8] sm:$0xff]  ;;  %v419_v3 = vld [vmem:[%s2029_s9] sm:$0xff]  ;;  %v2048_v8 = vld [vmem:[%s2029_s9 + $0x38] sm:$0xff]  ;;  %s2063_s16 = scalar_lea.vmem %s2423_s1, %s2034_s10  ;;  %s1615_s17 = sshll.u32 %s2021_s29, 2 }
  0x22   : > { %816 = vperm.xlu0 %1842, %v420_v2   ;;  %647 = vperm.xlu1 %1838, %v419_v3   ;;  %v423_v4 = vld [vmem:[%s2029_s9 + $0x20] sm:$0xff]  ;;  %v1862_v6 = vld [vmem:[%s2040_s13 + $0x8] sm:$0xff]   ;;  %v422_v9 = vld [vmem:[%s2029_s9 + $0x18] sm:$0xff]  ;;  %s371_s20 = scalar_lea.vmem %s2427_s5, %s1615_s17  ;;  %s2152_s23 = scalar_lea.vmem %s2425_s3, %s2034_s10 }
  0x23   : > { %v1861_v5 = vld [vmem:[%s2040_s13] sm:$0xff]   ;;  %v2054_v10 = vld [vmem:[%s2029_s9 + $0x48] sm:$0xff]  ;;  %v1117_v12 = vsel %vm1088_vm0, %v1862_v6, 0  ;;  %v1863_v13 = vld [vmem:[%s2040_s13 + $0x10] sm:$0xff]   ;;  %s2395_s12 = scalar_lea.vmem %s2428_s6, %s1655_s30 }
  0x24   : > { %1753 = vmatprep.subr.msk.bf16.mxu0 %vm1088_vm0, %v1861_v5  ;;  %v1114_v7 = vsel %vm1088_vm0, %v1861_v5, 0  ;;  %v1869_v14 = vld [vmem:[%s2063_s16] sm:$0xff]   ;;  %v1120_v15 = vsel %vm1088_vm0, %v1863_v13, 0  ;;  %v1864_v16 = vld [vmem:[%s2040_s13 + $0x18] sm:$0xff]   ;;  %v421_v17 = vld [vmem:[%s2029_s9 + $0x10] sm:$0xff] }
  0x25   : > { %1690 = vmatpush3.bf16.xpose.msra.mxu0 %v1114_v7  ;;  %1705 = vmatprep.mubr.msk.bf16.mxu0 %vm1088_vm0, %v1869_v14  ;;  %v1123_v18 = vsel %vm1088_vm0, %v1864_v16, 0  ;;  %v1865_v19 = vld [vmem:[%s2040_s13 + $0x20] sm:$0xff]   ;;  %v424_v20 = vld [vmem:[%s2029_s9 + $0x28] sm:$0xff]  ;;  %v2084_v22 = vld [vmem:[%s2029_s9 + $0x50] sm:$0xff] }
  0x26   : > { %828 = vperm.xlu0 %1842, %v423_v4   ;;  %651 = vperm.xlu1 %1838, %v420_v2   ;;  %v1126_v21 = vsel %vm1088_vm0, %v1865_v19, 0  ;;  %v1866_v23 = vld [vmem:[%s2040_s13 + $0x28] sm:$0xff]   ;;  %v2090_v24 = vld [vmem:[%s2029_s9 + $0x60] sm:$0xff]  ;;  %v425_v25 = vld [vmem:[%s2029_s9 + $0x30] sm:$0xff] }
  0x27   : > { %1754 = vmatprep.subr.msk.bf16.mxu0 %vm1088_vm0, %v1862_v6  ;;  %v1129_v26 = vsel %vm1088_vm0, %v1866_v23, 0  ;;  %v1867_v27 = vld [vmem:[%s2040_s13 + $0x30] sm:$0xff]   ;;  %v1868_v29 = vld [vmem:[%s2040_s13 + $0x38] sm:$0xff]   ;;  %v432_v31 = vld [vmem:[%s2029_s9 + $0x68] sm:$0xff] }
  0x28   : > { %v1132_v28 = vsel %vm1088_vm0, %v1867_v27, 0  ;;  %v1135_v30 = vsel %vm1088_vm0, %v1868_v29, 0  ;;  %v427_v32 = vld [vmem:[%s2029_s9 + $0x40] sm:$0xff]  ;;  %v1870_v33 = vld [vmem:[%s2063_s16 + $0x8] sm:$0xff]   ;;  %v433_v34 = vld [vmem:[%s2029_s9 + $0x70] sm:$0xff] }
  0x29   : > { %v1871_v35 = vld [vmem:[%s2063_s16 + $0x10] sm:$0xff]   ;;  %v1872_v36 = vld [vmem:[%s2063_s16 + $0x18] sm:$0xff]   ;;  %v1873_v37 = vld [vmem:[%s2063_s16 + $0x20] sm:$0xff]  }
  0x2a   : > { %840 = vperm.xlu0 %1842, %v2048_v8   ;;  %1839 = vset.pattern.permute.xlu1 %v1958_v11  ;;  %v434_v38 = vld [vmem:[%s2029_s9 + $0x78] sm:$0xff]  ;;  %v1874_v40 = vld [vmem:[%s2063_s16 + $0x28] sm:$0xff]   ;;  %v1875_v41 = vld [vmem:[%s2063_s16 + $0x30] sm:$0xff]  }
  0x2b   : > { %498 = vperm.xlu1 %1839, %v422_v9   ;;  %v430_v39 = vld [vmem:[%s2029_s9 + $0x58] sm:$0xff]  ;;  %v435_v46 = vld [vmem:[%s371_s20] sm:$0x7]  ;;  %v1878_v52 = vld [vmem:[%s2152_s23 + $0x8] sm:$0xff]   ;;  %s2180_s9 = sld [smem:[#allocation3 + %s479_s8]] }
  0x2c   : > { %v1876_v42 = vld [vmem:[%s2063_s16 + $0x38] sm:$0xff]   ;;  %v2146_v47 = vrot.slane %v435_v46, %v712_v45  ;;  %v1877_v48 = vld [vmem:[%s2152_s23] sm:$0xff]   ;;  %v1879_v57 = vld [vmem:[%s2152_s23 + $0x10] sm:$0xff]   ;;  %v2168_v60 = vrot.slane %v435_v46, %v563_v54  ;;  %v2172_v63 = vrot.slane %v435_v46, %v877_v58 }
  0x2d   : > { %1692 = vmatpush3.bf16.xpose.msra.mxu0 %v1117_v12  ;;  %1721 = vmatprep.subr.bf16.mxu1 %v1877_v48  ;;  %v1880_v62 = vld [vmem:[%s2152_s23 + $0x18] sm:$0xff]   ;;  %v1881_v5 = vld [vmem:[%s2152_s23 + $0x20] sm:$0xff]  }
  0x2e   : > { %848 = vperm.xlu0 %1842, %v2054_v10   ;;  %1755 = vmatprep.subr.msk.bf16.mxu0 %vm1088_vm0, %v1863_v13  ;;  %v2185_v13 = vstv %s476_s7 }
  0x2f   : > { %1840 = vset.pattern.permute.xlu1 %v1957_v1  ;;  %1722 = vmatpush3.bf16.msra.mxu1 %v1877_v48  ;;  %v1884_v48 = vld [vmem:[%s2152_s23 + $0x38] sm:$0xff]  }
  0x30   : > { %659 = vperm.xlu1 %1840, %v422_v9   ;;  %1723 = vmatprep.subr.bf16.mxu1 %v1878_v52 }
  0x32   : > { %1853 = vset.pattern.permute.xlu0 %v1958_v11 }
  0x33   : > { %483 = vperm.xlu0 %1853, %v419_v3   ;;  %1724 = vmatpush3.bf16.msra.mxu1 %v1878_v52 }
  0x34   : > { %1841 = vset.pattern.permute.xlu1 %v1956_v0  ;;  %1725 = vmatprep.subr.bf16.mxu1 %v1879_v57 }
  0x35   : > { %812 = vperm.xlu1 %1841, %v419_v3   ;;  %1694 = vmatpush3.bf16.xpose.msra.mxu0 %v1120_v15 }
  0x36   : > { %1756 = vmatprep.subr.msk.bf16.mxu0 %vm1088_vm0, %v1864_v16 }
  0x37   : > { %488 = vperm.xlu0 %1853, %v420_v2   ;;  %1726 = vmatpush3.bf16.msra.mxu1 %v1879_v57 }
  0x38   : > { %1727 = vmatprep.subr.bf16.mxu1 %v1880_v62 }
  0x39   : > { %820 = vperm.xlu1 %1841, %v421_v17  }
  0x3b   : > { %493 = vperm.xlu0 %1853, %v421_v17   ;;  %1728 = vmatpush3.bf16.msra.mxu1 %v1880_v62 }
  0x3c   : > { %1729 = vmatprep.subr.bf16.mxu1 %v1881_v5 }
  0x3d   : > { %824 = vperm.xlu1 %1841, %v422_v9   ;;  %1696 = vmatpush3.bf16.xpose.msra.mxu0 %v1123_v18  ;;  %v1882_v18 = vld [vmem:[%s2152_s23 + $0x28] sm:$0xff]  }
  0x3e   : > { %1757 = vmatprep.subr.msk.bf16.mxu0 %vm1088_vm0, %v1865_v19 }
  0x3f   : > { %503 = vperm.xlu0 %1853, %v423_v4   ;;  %1730 = vmatpush3.bf16.msra.mxu1 %v1881_v5 }
  0x40   : > { %1731 = vmatprep.subr.bf16.mxu1 %v1882_v18 }
  0x41   : > { %1843 = vset.pattern.permute.xlu1 %v1958_v11 }
  0x42   : > { %508 = vperm.xlu1 %1843, %v424_v20  }
  0x43   : > { %528 = vperm.xlu0 %1853, %v2054_v10   ;;  %1732 = vmatpush3.bf16.msra.mxu1 %v1882_v18 }
  0x45   : > { %1698 = vmatpush3.bf16.xpose.msra.mxu0 %v1126_v21 }
  0x46   : > { %1844 = vset.pattern.permute.xlu1 %v1957_v1  ;;  %1758 = vmatprep.subr.msk.bf16.mxu0 %vm1088_vm0, %v1866_v23 }
  0x47   : > { %533 = vperm.xlu0 %1853, %v2084_v22   ;;  %663 = vperm.xlu1 %1844, %v423_v4  }
  0x4b   : > { %543 = vperm.xlu0 %1853, %v2090_v24   ;;  %1845 = vset.pattern.permute.xlu1 %v1958_v11 }
  0x4c   : > { %513 = vperm.xlu1 %1845, %v425_v25  }
  0x4d   : > { %1700 = vmatpush3.bf16.xpose.msra.mxu0 %v1129_v26 }
  0x4e   : > { %1759 = vmatprep.subr.msk.bf16.mxu0 %vm1088_vm0, %v1867_v27 }
  0x4f   : > { %1854 = vset.pattern.permute.xlu0 %v1957_v1 }
  0x50   : > { %655 = vperm.xlu0 %1854, %v421_v17   ;;  %518 = vperm.xlu1 %1845, %v2048_v8  }
  0x54   : > { %667 = vperm.xlu0 %1854, %v424_v20   ;;  %1846 = vset.pattern.permute.xlu1 %v1957_v1 }
  0x55   : > { %675 = vperm.xlu1 %1846, %v2048_v8   ;;  %1702 = vmatpush3.bf16.xpose.msra.mxu0 %v1132_v28 }
  0x56   : > { %1760 = vmatprep.subr.msk.bf16.mxu0 %vm1088_vm0, %v1868_v29 }
  0x58   : > { %671 = vperm.xlu0 %1854, %v425_v25  }
  0x59   : > { %1847 = vset.pattern.permute.xlu1 %v1956_v0 }
  0x5a   : > { %832 = vperm.xlu1 %1847, %v424_v20  }
  0x5c   : > { %687 = vperm.xlu0 %1854, %v2084_v22  }
  0x5d   : > { %1704 = vmatpush3.bf16.xpose.msra.mxu0 %v1135_v30 }
  0x5e   : > { %836 = vperm.xlu1 %1847, %v425_v25  }
  0x60   : > { %699 = vperm.xlu0 %1854, %v432_v31  }
  0x62   : > { %1848 = vset.pattern.permute.xlu1 %v1958_v11 }
  0x63   : > { %523 = vperm.xlu1 %1848, %v427_v32  }
  0x64   : > { %703 = vperm.xlu0 %1854, %v433_v34   ;;  %1706 = vmatmul.mubr.msk.bf16.vlgmr.msra.gmra.mrb[0].mxu0 %vm1088_vm0, %v1870_v33 }
  0x65   : > { %1709 = vmatprep.mubr.msk.bf16.mxu0 %vm1088_vm0, %v1871_v35 }
  0x67   : > { %1849 = vset.pattern.permute.xlu1 %v1957_v1 }
  0x68   : > { %1859 = vset.pattern.permute.xlu0 %v1956_v0  ;;  %679 = vperm.xlu1 %1849, %v427_v32  }
  0x69   : > { %860 = vperm.xlu0 %1859, %v2090_v24  }
  0x6c   : > { %683 = vperm.xlu1 %1849, %v2054_v10   ;;  %1710 = vmatmul.mubr.msk.bf16.gmra.mrb[4].mxu0 %vm1088_vm0, %v1872_v36 }
  0x6d   : > { %1713 = vmatprep.mubr.msk.bf16.mxu0 %vm1088_vm0, %v1873_v37  ;;  %872 = vperm.xlu0 %1859, %v434_v38  }
  0x70   : > { %1850 = vset.pattern.permute.xlu1 %v1958_v11 }
  0x71   : > { %538 = vperm.xlu1 %1850, %v430_v39  }
  0x74   : > { %1714 = vmatmul.mubr.msk.bf16.gmra.mrb[8].mxu0 %vm1088_vm0, %v1874_v40 }
  0x75   : > { %1851 = vset.pattern.permute.xlu1 %v1957_v1  ;;  %1717 = vmatprep.mubr.msk.bf16.mxu0 %vm1088_vm0, %v1875_v41 }
  0x76   : > { %691 = vperm.xlu1 %1851, %v430_v39  }
  0x7a   : > { %1852 = vset.pattern.permute.xlu1 %v1956_v0 }
  0x7b   : > { %844 = vperm.xlu1 %1852, %v427_v32   ;;  %v2196_v32 = vstv %s2180_s9 }
  0x7c   : > { %1718 = vmatmul.mubr.msk.bf16.gmra.mrb[12].mxu0 %vm1088_vm0, %v1876_v42 }
  0x7f   : > { %852 = vperm.xlu1 %1852, %v2084_v22  }
  0x83   : > { %856 = vperm.xlu1 %1852, %v430_v39  }
  0x87   : > { %1855 = vset.pattern.permute.xlu1 %v1958_v11 }
  0x88   : > { %548 = vperm.xlu1 %1855, %v432_v31  }
  0x8c   : > { %1856 = vset.pattern.permute.xlu1 %v1957_v1 }
  0x8d   : > { %695 = vperm.xlu1 %1856, %v2090_v24  }
  0x91   : > { %1857 = vset.pattern.permute.xlu1 %v1958_v11  ;;  %v2183_v11 = vstv %s478_s26 }
  0x92   : > { %553 = vperm.xlu1 %1857, %v433_v34  }
  0x96   : > { %558 = vperm.xlu1 %1857, %v434_v38  }
  0x9a   : > { %1858 = vset.pattern.permute.xlu1 %v1957_v1 }
  0x9b   : > { %707 = vperm.xlu1 %1858, %v434_v38  }
  0x9f   : > { %1860 = vset.pattern.permute.xlu1 %v1956_v0 }
  0xa0   : > { %864 = vperm.xlu1 %1860, %v432_v31   ;;  %v1883_v31 = vld [vmem:[%s2152_s23 + $0x30] sm:$0xff]  }
  0xa1   : > { %v817_v49 = vpop.permute.xlu0 %816  ;;  %v648_v50 = vpop.permute.xlu1 %647  ;;  %1733 = vmatprep.subr.bf16.mxu1 %v1883_v31 }
  0xa2   : > { %v714_v51 = vsub.f32 %v648_v50, %v2146_v47  ;;  %v880_v3 = vsub.f32 %v817_v49, %v2172_v63  ;;  %1734 = vmatpush3.bf16.msra.mxu1 %v1883_v31 }
  0xa3   : > { %1735 = vmatprep.subr.bf16.mxu1 %v1884_v48 }
  0xa4   : > { %868 = vperm.xlu1 %1860, %v433_v34   ;;  %v1777_v1 = vround.rtne.f32 %v714_v51  ;;  %v1794_v10 = vround.rtne.f32 %v880_v3 }
  0xa5   : > { %v2161_v53 = vpop.permute.xlu0 %828  ;;  %v652_v55 = vpop.permute.xlu1 %651 }
  0xa6   : > { %v715_v56 = vsub.f32 %v652_v55, %v2146_v47  ;;  %v746_v8 = vsub.f32 %v714_v51, %v1777_v1  ;;  %v912_v23 = vsub.f32 %v880_v3, %v1794_v10  ;;  %1736 = vmatpush3.bf16.msra.mxu1 %v1884_v48 }
  0xa8   : > { %v1778_v12 = vround.rtne.f32 %v715_v56  ;;  %v763_v19 = vmul.f32 %v2183_v11, %v746_v8  ;;  %v929_v39 = vmul.f32 %v2196_v32, %v912_v23 }
  0xa9   : > { %v2166_v59 = vpop.permute.xlu0 %840 }
  0xaa   : > { %v499_v61 = vpop.permute.xlu1 %498  ;;  %v747_v24 = vsub.f32 %v715_v56, %v1778_v12  ;;  %v779_v34 = vmul.f32 %v763_v19, %v746_v8  ;;  %v945_v57 = vmul.f32 %v929_v39, %v912_v23 }
  0xab   : > { %v568_v0 = vsub.f32 %v499_v61, %v2168_v60 }
  0xac   : > { %v764_v43 = vmul.f32 %v2183_v11, %v747_v24 }
  0xad   : > { %v2176_v2 = vpop.permute.xlu0 %848  ;;  %v1764_v4 = vround.rtne.f32 %v568_v0 }
  0xae   : > { %v780_v58 = vmul.f32 %v764_v43, %v747_v24 }
  0xaf   : > { %v600_v6 = vsub.f32 %v568_v0, %v1764_v4  ;;  %v660_v7 = vpop.permute.xlu1 %659 }
  0xb0   : > { %v717_v9 = vsub.f32 %v660_v7, %v2146_v47 }
  0xb1   : > { %v617_v15 = vmul.f32 %v2185_v13, %v600_v6 }
  0xb2   : > { %v484_v14 = vpop.permute.xlu0 %483  ;;  %v1780_v17 = vround.rtne.f32 %v717_v9 }
  0xb3   : > { %v565_v16 = vsub.f32 %v484_v14, %v2168_v60  ;;  %v633_v27 = vmul.f32 %v617_v15, %v600_v6 }
  0xb4   : > { %v749_v21 = vsub.f32 %v717_v9, %v1780_v17  ;;  %v813_v22 = vpop.permute.xlu1 %812 }
  0xb5   : > { %v1761_v20 = vround.rtne.f32 %v565_v16  ;;  %v879_v26 = vsub.f32 %v813_v22, %v2172_v63 }
  0xb6   : > { %v489_v25 = vpop.permute.xlu0 %488  ;;  %v766_v29 = vmul.f32 %v2183_v11, %v749_v21 }
  0xb7   : > { %v597_v28 = vsub.f32 %v565_v16, %v1761_v20  ;;  %v566_v30 = vsub.f32 %v489_v25, %v2168_v60  ;;  %v1793_v33 = vround.rtne.f32 %v879_v26 }
  0xb8   : > { %v782_v36 = vmul.f32 %v766_v29, %v749_v21  ;;  %v821_v38 = vpop.permute.xlu1 %820 }
  0xb9   : > { %v614_v35 = vmul.f32 %v2185_v13, %v597_v28  ;;  %v1762_v37 = vround.rtne.f32 %v566_v30  ;;  %v911_v40 = vsub.f32 %v879_v26, %v1793_v33  ;;  %v881_v42 = vsub.f32 %v821_v38, %v2172_v63 }
  0xba   : > { %v494_v41 = vpop.permute.xlu0 %493  ;;  %v798_v45 = vadd.f32 %v782_v36, %v633_v27 }
  0xbb   : > { %v630_v44 = vmul.f32 %v614_v35, %v597_v28  ;;  %v598_v46 = vsub.f32 %v566_v30, %v1762_v37  ;;  %v928_v49 = vmul.f32 %v2196_v32, %v911_v40  ;;  %v567_v9 = vsub.f32 %v494_v41, %v2168_v60 }
  0xbc   : > { %v825_v52 = vpop.permute.xlu1 %824  ;;  %v1795_v19 = vround.rtne.f32 %v881_v42 }
  0xbd   : > { %v795_v50 = vadd.f32 %v779_v34, %v630_v44  ;;  %v615_v51 = vmul.f32 %v2185_v13, %v598_v46  ;;  %v944_v54 = vmul.f32 %v928_v49, %v911_v40  ;;  %v882_v56 = vsub.f32 %v825_v52, %v2172_v63 }
  0xbe   : > { %v2205_v55 = vpop.permute.xlu0 %503  ;;  %v1763_v16 = vround.rtne.f32 %v567_v9  ;;  %v913_v25 = vsub.f32 %v881_v42, %v1795_v19 }
  0xbf   : > { %v631_v61 = vmul.f32 %v615_v51, %v598_v46  ;;  %v2208_v62 = vadd.f32 %v944_v54, %v795_v50  ;;  %v1796_v0 = vround.rtne.f32 %v882_v56 }
  0xc0   : > { %v599_v20 = vsub.f32 %v567_v9, %v1763_v16  ;;  %v930_v33 = vmul.f32 %v2196_v32, %v913_v25  ;;  %v883_v16 = vsub.f32 %v2161_v53, %v2172_v63 }
  0xc1   : > { %v796_v1 = vadd.f32 %v780_v58, %v631_v61  ;;  %v914_v3 = vsub.f32 %v882_v56, %v1796_v0  ;;  %v509_v5 = vpop.permute.xlu1 %508 }
  0xc2   : > { %v2210_v4 = vpop.permute.xlu0 %528  ;;  %v570_v8 = vsub.f32 %v509_v5, %v2168_v60  ;;  %v616_v26 = vmul.f32 %v2185_v13, %v599_v20  ;;  %v946_v41 = vmul.f32 %v930_v33, %v913_v25  ;;  %v1797_v25 = vround.rtne.f32 %v883_v16 }
  0xc3   : > { %v2212_v6 = vadd.f32 %v945_v57, %v796_v1  ;;  %v931_v7 = vmul.f32 %v2196_v32, %v914_v3 }
  0xc4   : > { %v1766_v21 = vround.rtne.f32 %v570_v8  ;;  %v632_v35 = vmul.f32 %v616_v26, %v599_v20  ;;  %v886_v26 = vsub.f32 %v2166_v59, %v2172_v63  ;;  %v915_v53 = vsub.f32 %v883_v16, %v1797_v25 }
  0xc5   : > { %v947_v10 = vmul.f32 %v931_v7, %v914_v3 }
  0xc6   : > { %v2217_v12 = vpop.permute.xlu0 %533  ;;  %v664_v14 = vpop.permute.xlu1 %663  ;;  %v602_v27 = vsub.f32 %v570_v8, %v1766_v21  ;;  %v569_v8 = vsub.f32 %v2205_v55, %v2168_v60 }
  0xc7   : > { %v2219_v15 = vadd.f32 %v947_v10, %v798_v45  ;;  %v718_v9 = vsub.f32 %v664_v14, %v2146_v47 }
  0xc8   : > { %v619_v36 = vmul.f32 %v2185_v13, %v602_v27  ;;  %v1765_v19 = vround.rtne.f32 %v569_v8 }
  0xc9   : > { %v1781_v20 = vround.rtne.f32 %v718_v9 }
  0xca   : > { %v2221_v17 = vpop.permute.xlu0 %543  ;;  %v635_v42 = vmul.f32 %v619_v36, %v602_v27  ;;  %v601_v55 = vsub.f32 %v569_v8, %v1765_v19 }
  0xcb   : > { %v2223_v18 = vpop.permute.xlu1 %513  ;;  %v750_v27 = vsub.f32 %v718_v9, %v1781_v20  ;;  %v577_v19 = vsub.f32 %v2221_v17, %v2168_v60 }
  0xcc   : > { %v618_v33 = vmul.f32 %v2185_v13, %v601_v55 }
  0xcd   : > { %v1773_v17 = vround.rtne.f32 %v577_v19 }
  0xcf   : > { %v656_v22 = vpop.permute.xlu0 %655  ;;  %v519_v24 = vpop.permute.xlu1 %518 }
  0xd0   : > { %v716_v23 = vsub.f32 %v656_v22, %v2146_v47  ;;  %v572_v21 = vsub.f32 %v519_v24, %v2168_v60  ;;  %v888_v24 = vsub.f32 %v2176_v2, %v2172_v63  ;;  %v575_v2 = vsub.f32 %v2217_v12, %v2168_v60 }
  0xd2   : > { %v1779_v28 = vround.rtne.f32 %v716_v23  ;;  %v1768_v14 = vround.rtne.f32 %v572_v21  ;;  %v1771_v12 = vround.rtne.f32 %v575_v2 }
  0xd3   : > { %v668_v29 = vpop.permute.xlu0 %667 }
  0xd4   : > { %v748_v30 = vsub.f32 %v716_v23, %v1779_v28  ;;  %v719_v31 = vsub.f32 %v668_v29, %v2146_v47  ;;  %v676_v34 = vpop.permute.xlu1 %675  ;;  %v604_v59 = vsub.f32 %v572_v21, %v1768_v14 }
  0xd5   : > { %v721_v23 = vsub.f32 %v676_v34, %v2146_v47  ;;  %v767_v34 = vmul.f32 %v2183_v11, %v750_v27 }
  0xd6   : > { %v765_v37 = vmul.f32 %v2183_v11, %v748_v30  ;;  %v1782_v38 = vround.rtne.f32 %v719_v31 }
  0xd7   : > { %v1784_v28 = vround.rtne.f32 %v721_v23 }
  0xd8   : > { %v781_v39 = vmul.f32 %v765_v37, %v748_v30  ;;  %v751_v40 = vsub.f32 %v719_v31, %v1782_v38  ;;  %v672_v30 = vpop.permute.xlu0 %671  ;;  %v1800_v31 = vround.rtne.f32 %v886_v26  ;;  %v574_v38 = vsub.f32 %v2210_v4, %v2168_v60 }
  0xd9   : > { %v833_v45 = vpop.permute.xlu1 %832  ;;  %v753_v36 = vsub.f32 %v721_v23, %v1784_v28  ;;  %v720_v37 = vsub.f32 %v672_v30, %v2146_v47 }
  0xda   : > { %v797_v43 = vadd.f32 %v781_v39, %v632_v35  ;;  %v768_v44 = vmul.f32 %v2183_v11, %v751_v40  ;;  %v884_v46 = vsub.f32 %v833_v45, %v2172_v63  ;;  %v571_v35 = vsub.f32 %v2223_v18, %v2168_v60 }
  0xdb   : > { %v783_v45 = vmul.f32 %v767_v34, %v750_v27 }
  0xdc   : > { %v2233_v48 = vadd.f32 %v946_v41, %v797_v43  ;;  %v784_v49 = vmul.f32 %v768_v44, %v751_v40  ;;  %v1798_v50 = vround.rtne.f32 %v884_v46  ;;  %v688_v39 = vpop.permute.xlu0 %687  ;;  %v932_v40 = vmul.f32 %v2196_v32, %v915_v53 }
  0xdd   : > { %v837_v52 = vpop.permute.xlu1 %836  ;;  %v918_v41 = vsub.f32 %v886_v26, %v1800_v31  ;;  %v634_v44 = vmul.f32 %v618_v33, %v601_v55  ;;  %v1767_v18 = vround.rtne.f32 %v571_v35  ;;  %v724_v4 = vsub.f32 %v688_v39, %v2146_v47 }
  0xde   : > { %v800_v51 = vadd.f32 %v784_v49, %v635_v42  ;;  %v916_v54 = vsub.f32 %v884_v46, %v1798_v50  ;;  %v1802_v42 = vround.rtne.f32 %v888_v24  ;;  %v621_v46 = vmul.f32 %v2185_v13, %v604_v59 }
  0xdf   : > { %v770_v49 = vmul.f32 %v2183_v11, %v753_v36  ;;  %v1783_v50 = vround.rtne.f32 %v720_v37  ;;  %v799_v16 = vadd.f32 %v783_v45, %v634_v44  ;;  %v603_v20 = vsub.f32 %v571_v35, %v1767_v18 }
  0xe0   : > { %v933_v56 = vmul.f32 %v2196_v32, %v916_v54  ;;  %v920_v8 = vsub.f32 %v888_v24, %v1802_v42  ;;  %v637_v21 = vmul.f32 %v621_v46, %v604_v59  ;;  %v700_v23 = vpop.permute.xlu0 %699  ;;  %v1787_v55 = vround.rtne.f32 %v724_v4 }
  0xe1   : > { %v786_v25 = vmul.f32 %v770_v49, %v753_v36  ;;  %v752_v26 = vsub.f32 %v720_v37, %v1783_v50  ;;  %v727_v27 = vsub.f32 %v700_v23, %v2146_v47  ;;  %v976_v24 = vmul.f32 1.442695, %v2208_v62 }
  0xe2   : > { %v949_v57 = vmul.f32 %v933_v56, %v916_v54  ;;  %v2236_v58 = vpop.permute.xlu1 %523  ;;  %v885_v54 = vsub.f32 %v837_v52, %v2172_v63  ;;  %v948_v56 = vmul.f32 %v932_v40, %v915_v53  ;;  %v937_v30 = vmul.f32 %v2196_v32, %v920_v8 }
  0xe3   : > { %v607_v53 = vsub.f32 %v575_v2, %v1771_v12  ;;  %v620_v34 = vmul.f32 %v2185_v13, %v603_v20  ;;  %v802_v35 = vadd.f32 %v786_v25, %v637_v21  ;;  %v769_v59 = vmul.f32 %v2183_v11, %v752_v26 }
  0xe4   : > { %v2238_v61 = vadd.f32 %v949_v57, %v800_v51  ;;  %v1770_v51 = vround.rtne.f32 %v574_v38  ;;  %v935_v57 = vmul.f32 %v2196_v32, %v918_v41  ;;  %v1799_v14 = vround.rtne.f32 %v885_v54 }
  0xe5   : > { %v964_v33 = vadd.f32 %v948_v56, %v799_v16  ;;  %v756_v36 = vsub.f32 %v724_v4, %v1787_v55  ;;  %v1790_v37 = vround.rtne.f32 %v727_v27  ;;  %v2299_v42 = vmul.f32 %v937_v30, %v920_v8  ;;  %v704_v56 = vpop.permute.xlu0 %703 }
  0xe6   : > { %v606_v52 = vsub.f32 %v574_v38, %v1770_v51  ;;  %v951_v28 = vmul.f32 %v935_v57, %v918_v41  ;;  %v978_v38 = vmul.f32 1.442695, %v2212_v6  ;;  %v917_v40 = vsub.f32 %v885_v54, %v1799_v14 }
  0xe7   : > { %v2240_v0 = vpop.permute.xlu1 %679  ;;  %v573_v41 = vsub.f32 %v2236_v58, %v2168_v60  ;;  %v982_v62 = vmul.f32 1.442695, %v2219_v15  ;;  %v624_v2 = vmul.f32 %v2185_v13, %v607_v53  ;;  %1885 = vpow2.f32 %v976_v24 }
  0xe8   : > { %v623_v39 = vmul.f32 %v2185_v13, %v606_v52  ;;  %v984_v44 = vmul.f32 1.442695, %v964_v33  ;;  %v609_v45 = vsub.f32 %v577_v19, %v1773_v17  ;;  %v636_v18 = vmul.f32 %v620_v34, %v603_v20 }
  0xe9   : > { %v967_v49 = vadd.f32 %v951_v28, %v802_v35  ;;  %v785_v50 = vmul.f32 %v769_v59, %v752_v26  ;;  %v773_v6 = vmul.f32 %v2183_v11, %v756_v36  ;;  %v759_v4 = vsub.f32 %v727_v27, %v1790_v37  ;;  %v861_v33 = vpop.permute.xlu0 %860 }
  0xea   : > { %1887 = vpow2.f32 %v978_v38  ;;  %v2304_v51 = vmul.f32 %v623_v39, %v606_v52  ;;  %v934_v58 = vmul.f32 %v2196_v32, %v917_v40  ;;  %v1769_v54 = vround.rtne.f32 %v573_v41 }
  0xeb   : > { %v2242_v1 = vpop.permute.xlu1 %683  ;;  %1889 = vpow2.f32 %v982_v62  ;;  %v640_v15 = vmul.f32 %v624_v2, %v607_v53  ;;  %v728_v8 = vsub.f32 %v704_v56, %v2146_v47  ;;  %v626_v12 = vmul.f32 %v2185_v13, %v609_v45 }
  0xec   : > { %1891 = vpow2.f32 %v984_v44  ;;  %v980_v16 = vmul.f32 1.442695, %v2233_v48  ;;  %v990_v20 = vmul.f32 1.442695, %v967_v49  ;;  %v801_v21 = vadd.f32 %v785_v50, %v636_v18 }
  0xed   : > { %v789_v23 = vmul.f32 %v773_v6, %v756_v36  ;;  %v776_v25 = vmul.f32 %v2183_v11, %v759_v4  ;;  %v950_v26 = vmul.f32 %v934_v58, %v917_v40  ;;  %v605_v55 = vsub.f32 %v573_v41, %v1769_v54  ;;  %v873_v2 = vpop.permute.xlu0 %872 }
  0xee   : > { %v723_v27 = vsub.f32 %v2242_v1, %v2146_v47  ;;  %v986_v14 = vmul.f32 1.442695, %v2238_v61  ;;  %v1791_v28 = vround.rtne.f32 %v728_v8  ;;  %v2322_v30 = vmul.f32 %v626_v12, %v609_v45 }
  0xef   : > { %1893 = vpow2.f32 %v980_v16  ;;  %v2330_v61 = vmul.f32 %v776_v25, %v759_v4  ;;  %v622_v34 = vmul.f32 %v2185_v13, %v605_v55  ;;  %v891_v41 = vsub.f32 %v861_v33, %v2172_v63 }
  0xf0   : > { %v2244_v3 = vpop.permute.xlu1 %538  ;;  %1895 = vpow2.f32 %v990_v20  ;;  %v1786_v59 = vround.rtne.f32 %v723_v27 }
  0xf1   : > { %v576_v57 = vsub.f32 %v2244_v3, %v2168_v60  ;;  %v722_v3 = vsub.f32 %v2240_v0, %v2146_v47  ;;  %v2326_v0 = vadd.f32 %v789_v23, %v640_v15  ;;  %v2332_v17 = vpop.eup %1885  ;;  %1897 = vpow2.f32 %v986_v14 }
  0xf2   : > { %v638_v58 = vmul.f32 %v622_v34, %v605_v55  ;;  %v755_v54 = vsub.f32 %v723_v27, %v1786_v59 }
  0xf3   : > { %v1772_v48 = vround.rtne.f32 %v576_v57  ;;  %v1785_v35 = vround.rtne.f32 %v722_v3 }
  0xf4   : > { %v2337_v38 = vpop.eup %1887  ;;  %v772_v25 = vmul.f32 %v2183_v11, %v755_v54 }
  0xf5   : > { %v2246_v5 = vpop.permute.xlu1 %691  ;;  %v608_v36 = vsub.f32 %v576_v57, %v1772_v48  ;;  %v2342_v44 = vpop.eup %1889 }
  0xf6   : > { %v725_v19 = vsub.f32 %v2246_v5, %v2146_v47  ;;  %v2349_v6 = vpop.eup %1891 }
  0xf7   : > { %v625_v56 = vmul.f32 %v2185_v13, %v608_v36 }
  0xf8   : > { %v1788_v53 = vround.rtne.f32 %v725_v19 }
  0xf9   : > { %v641_v27 = vmul.f32 %v625_v56, %v608_v36 }
  0xfa   : > { %v2248_v7 = vpop.permute.xlu1 %844  ;;  %v757_v39 = vsub.f32 %v725_v19, %v1788_v53 }
  0xfb   : > { %v887_v24 = vsub.f32 %v2248_v7, %v2172_v63  ;;  %v2335_v7 = vsub.f32 %v728_v8, %v1791_v28  ;;  %v894_v8 = vsub.f32 %v873_v2, %v2172_v63 }
  0xfd   : > { %v1801_v40 = vround.rtne.f32 %v887_v24 }
  0xfe   : > { %v2253_v10 = vpop.permute.xlu1 %852 }
  0xff   : > { %v889_v5 = vsub.f32 %v2253_v10, %v2172_v63  ;;  %v966_v10 = vadd.f32 %v950_v26, %v801_v21  ;;  %v919_v12 = vsub.f32 %v887_v24, %v1801_v40  ;;  %v1894_v21 = vpop.eup %1893  ;;  %v1805_v26 = vround.rtne.f32 %v891_v41 }
 0x101   : > { %v1803_v37 = vround.rtne.f32 %v889_v5  ;;  %v988_v4 = vmul.f32 1.442695, %v966_v10 }
 0x102   : > { %v2258_v22 = vpop.permute.xlu1 %856 }
 0x103   : > { %v890_v1 = vsub.f32 %v2258_v22, %v2172_v63  ;;  %v921_v15 = vsub.f32 %v889_v5, %v1803_v37  ;;  %v936_v5 = vmul.f32 %v2196_v32, %v919_v12  ;;  %v777_v37 = vmul.f32 %v2183_v11, %v2335_v7 }
 0x104   : > { %1899 = vpow2.f32 %v988_v4 }
 0x105   : > { %v1804_v45 = vround.rtne.f32 %v890_v1  ;;  %v938_v14 = vmul.f32 %v2196_v32, %v921_v15  ;;  %v952_v2 = vmul.f32 %v936_v5, %v919_v12 }
 0x107   : > { %v2263_v29 = vpop.permute.xlu1 %548  ;;  %v954_v36 = vmul.f32 %v938_v14, %v921_v15 }
 0x10c   : > { %v2277_v43 = vpop.permute.xlu1 %695 }
 0x10d   : > { %v726_v22 = vsub.f32 %v2277_v43, %v2146_v47  ;;  %v754_v43 = vsub.f32 %v722_v3, %v1785_v35  ;;  %v2360_v3 = vpop.eup %1895  ;;  %v923_v35 = vsub.f32 %v891_v41, %v1805_v26 }
 0x10e   : > { %v2364_v24 = vpop.eup %1897 }
 0x10f   : > { %v771_v23 = vmul.f32 %v2183_v11, %v754_v43 }
 0x111   : > { %v2284_v9 = vpop.permute.xlu1 %553 }
 0x112   : > { %v579_v18 = vsub.f32 %v2284_v9, %v2168_v60  ;;  %v774_v9 = vmul.f32 %v2183_v11, %v757_v39 }
 0x114   : > { %v1775_v16 = vround.rtne.f32 %v579_v18 }
 0x115   : > { %v2290_v31 = vpop.permute.xlu1 %558 }
 0x116   : > { %v580_v49 = vsub.f32 %v2290_v31, %v2168_v60  ;;  %v578_v31 = vsub.f32 %v2263_v29, %v2168_v60  ;;  %v1808_v60 = vround.rtne.f32 %v894_v8  ;;  %v790_v29 = vmul.f32 %v774_v9, %v757_v39 }
 0x118   : > { %v1776_v19 = vround.rtne.f32 %v580_v49  ;;  %v1774_v28 = vround.rtne.f32 %v578_v31  ;;  %v926_v40 = vsub.f32 %v894_v8, %v1808_v60 }
 0x11a   : > { %v708_v46 = vpop.permute.xlu1 %707  ;;  %v612_v10 = vsub.f32 %v580_v49, %v1776_v19  ;;  %v943_v9 = vmul.f32 %v2196_v32, %v926_v40 }
 0x11b   : > { %v729_v50 = vsub.f32 %v708_v46, %v2146_v47  ;;  %v1789_v47 = vround.rtne.f32 %v726_v22  ;;  %v922_v46 = vsub.f32 %v890_v1, %v1804_v45  ;;  %v611_v1 = vsub.f32 %v579_v18, %v1775_v16 }
 0x11c   : > { %v629_v49 = vmul.f32 %v2185_v13, %v612_v10 }
 0x11d   : > { %v1792_v20 = vround.rtne.f32 %v729_v50  ;;  %v758_v53 = vsub.f32 %v726_v22, %v1789_v47  ;;  %v939_v33 = vmul.f32 %v2196_v32, %v922_v46  ;;  %v610_v22 = vsub.f32 %v578_v31, %v1774_v28 }
 0x11e   : > { %v628_v18 = vmul.f32 %v2185_v13, %v611_v1  ;;  %v793_v47 = vmul.f32 %v777_v37, %v2335_v7  ;;  %v645_v16 = vmul.f32 %v629_v49, %v612_v10 }
 0x11f   : > { %v865_v52 = vpop.permute.xlu1 %864  ;;  %v761_v34 = vsub.f32 %v729_v50, %v1792_v20  ;;  %v775_v45 = vmul.f32 %v2183_v11, %v758_v53  ;;  %v955_v56 = vmul.f32 %v939_v33, %v922_v46  ;;  %v627_v31 = vmul.f32 %v2185_v13, %v610_v22 }
 0x120   : > { %v892_v55 = vsub.f32 %v865_v52, %v2172_v63  ;;  %v788_v52 = vmul.f32 %v772_v25, %v755_v54  ;;  %v940_v54 = vmul.f32 %v2196_v32, %v923_v35 }
 0x121   : > { %v778_v50 = vmul.f32 %v2183_v11, %v761_v34  ;;  %v791_v46 = vmul.f32 %v775_v45, %v758_v53 }
 0x122   : > { %v1806_v59 = vround.rtne.f32 %v892_v55  ;;  %v956_v4 = vmul.f32 %v940_v54, %v923_v35 }
 0x123   : > { %v869_v62 = vpop.permute.xlu1 %868  ;;  %v807_v60 = vadd.f32 %v791_v46, %v2322_v30 }
 0x124   : > { %v893_v57 = vsub.f32 %v869_v62, %v2172_v63  ;;  %v787_v63 = vmul.f32 %v771_v23, %v754_v43  ;;  %v806_v62 = vadd.f32 %v790_v29, %v641_v27  ;;  %v804_v43 = vadd.f32 %v788_v52, %v2304_v51  ;;  %v1900_v52 = vpop.eup %1899 }
 0x125   : > { %v924_v15 = vsub.f32 %v892_v55, %v1806_v59  ;;  %v794_v51 = vmul.f32 %v778_v50, %v761_v34  ;;  %v959_v27 = vmul.f32 %v943_v9, %v926_v40 }
 0x126   : > { %v1807_v48 = vround.rtne.f32 %v893_v57  ;;  %v803_v41 = vadd.f32 %v787_v63, %v638_v58  ;;  %v971_v11 = vadd.f32 %v955_v56, %v806_v62  ;;  %v644_v58 = vmul.f32 %v628_v18, %v611_v1 }
 0x127   : > { %v969_v20 = vadd.f32 %v2299_v42, %v804_v43  ;;  %v810_v53 = vadd.f32 %v794_v51, %v645_v16  ;;  %v972_v63 = vadd.f32 %v956_v4, %v807_v60 }
 0x128   : > { %v925_v39 = vsub.f32 %v893_v57, %v1807_v48  ;;  %v970_v57 = vadd.f32 %v954_v36, %v2326_v0  ;;  %v968_v12 = vadd.f32 %v952_v2, %v803_v41  ;;  %v941_v0 = vmul.f32 %v2196_v32, %v924_v15 }
 0x129   : > { %v643_v48 = vmul.f32 %v627_v31, %v610_v22  ;;  %v998_v28 = vmul.f32 1.442695, %v971_v11  ;;  %v809_v42 = vadd.f32 %v793_v47, %v644_v58  ;;  %v975_v30 = vadd.f32 %v959_v27, %v810_v53 }
 0x12a   : > { %v942_v8 = vmul.f32 %v2196_v32, %v925_v39  ;;  %v996_v26 = vmul.f32 1.442695, %v970_v57  ;;  %v992_v7 = vmul.f32 1.442695, %v968_v12  ;;  %v957_v33 = vmul.f32 %v941_v0, %v924_v15 }
 0x12b   : > { %v1000_v40 = vmul.f32 1.442695, %v972_v63 }
 0x12c   : > { %v958_v55 = vmul.f32 %v942_v8, %v925_v39  ;;  %1901 = vpow2.f32 %v996_v26 }
 0x12d   : > { %1903 = vpow2.f32 %v992_v7 }
 0x12e   : > { %v974_v10 = vadd.f32 %v958_v55, %v809_v42  ;;  %1905 = vpow2.f32 %v998_v28 }
 0x136   : > { %v1902_v49 = vpop.eup %1901 }
 0x137   : > { %v1707_v19 = vpop.f32.mrb[0].mxu0  ;;  %v1904_v41 = vpop.eup %1903 }
 0x138   : > { %v1236_v23 = vmul.f32 %v1894_v21, %v1707_v19  ;;  %v1171_v25 = vpop.f32.mrb[1].mxu0  ;;  %v994_v21 = vmul.f32 1.442695, %v969_v20  ;;  %v1906_v54 = vpop.eup %1905 }
 0x139   : > { %v1234_v13 = vmul.f32 %v2332_v17, %v1171_v25  ;;  %v1708_v14 = vpop.f32.mrb[2].mxu0  ;;  %v808_v17 = vadd.f32 %v2330_v61, %v643_v48  ;;  %v1006_v61 = vmul.f32 1.442695, %v975_v30 }
 0x13a   : > { %v1237_v29 = vmul.f32 %v2342_v44, %v1708_v14  ;;  %v1174_v5 = vpop.f32.mrb[3].mxu0  ;;  %1907 = vpow2.f32 %v994_v21 }
 0x13b   : > { %v1235_v32 = vmul.f32 %v2337_v38, %v1174_v5  ;;  %v973_v35 = vadd.f32 %v957_v33, %v808_v17  ;;  %v1004_v38 = vmul.f32 1.442695, %v974_v10 }
 0x13c   : > { %v1267_v1 = vpack.c.bf16 %v1237_v29, %v1236_v23 }
 0x13d   : > { %v1266_v34 = vpack.c.bf16 %v1235_v32, %v1234_v13  ;;  %v1002_v45 = vmul.f32 1.442695, %v973_v35  ;;  %1909 = vpow2.f32 %v1004_v38 }
 0x13e   : > { %1911 = vpow2.f32 %v1000_v40 }
 0x13f   : > { %v1711_v44 = vpop.f32.mrb[4].mxu0  ;;  %1737 = vmatprep.mubr.bf16.mxu1 %v1266_v34  ;;  %1913 = vpow2.f32 %v1006_v61 }
 0x140   : > { %v1240_v59 = vmul.f32 %v1900_v52, %v1711_v44  ;;  %v1187_v36 = vpop.f32.mrb[5].mxu0  ;;  %1738 = vmatmul.mubr.bf16.vlgmr.msra.gmra.mrb[0].mxu1 %v1267_v1  ;;  %1915 = vpow2.f32 %v1002_v45 }
 0x141   : > { %v1238_v37 = vmul.f32 %v2349_v6, %v1187_v36  ;;  %v1712_v39 = vpop.f32.mrb[6].mxu0 }
 0x142   : > { %v1241_v62 = vmul.f32 %v2360_v3, %v1712_v39  ;;  %v1190_v2 = vpop.f32.mrb[7].mxu0 }
 0x143   : > { %v1239_v22 = vmul.f32 %v2364_v24, %v1190_v2 }
 0x144   : > { %v1269_v56 = vpack.c.bf16 %v1241_v62, %v1240_v59  ;;  %v1908_v57 = vpop.eup %1907 }
 0x145   : > { %v1268_v18 = vpack.c.bf16 %v1239_v22, %v1238_v37 }
 0x147   : > { %v1715_v50 = vpop.f32.mrb[8].mxu0  ;;  %1741 = vmatprep.mubr.bf16.mxu1 %v1268_v18  ;;  %v1910_v47 = vpop.eup %1909 }
 0x148   : > { %v1244_v6 = vmul.f32 %v1902_v49, %v1715_v50  ;;  %v1203_v43 = vpop.f32.mrb[9].mxu0  ;;  %1742 = vmatmul.mubr.bf16.gmra.mrb[4].mxu1 %v1269_v56  ;;  %v1912_v11 = vpop.eup %1911 }
 0x149   : > { %v1242_v3 = vmul.f32 %v1904_v41, %v1203_v43  ;;  %v1716_v15 = vpop.f32.mrb[10].mxu0  ;;  %v1914_v51 = vpop.eup %1913 }
 0x14a   : > { %v1245_v8 = vmul.f32 %v1906_v54, %v1716_v15  ;;  %v1206_v24 = vpop.f32.mrb[11].mxu0  ;;  %v1916_v4 = vpop.eup %1915 }
 0x14b   : > { %v1243_v9 = vmul.f32 %v1908_v57, %v1206_v24 }
 0x14c   : > { %v1271_v12 = vpack.c.bf16 %v1245_v8, %v1244_v6 }
 0x14d   : > { %v1270_v31 = vpack.c.bf16 %v1243_v9, %v1242_v3 }
 0x14f   : > { %v1719_v46 = vpop.f32.mrb[12].mxu0  ;;  %1745 = vmatprep.mubr.bf16.mxu1 %v1270_v31 }
 0x150   : > { %v1248_v58 = vmul.f32 %v1910_v47, %v1719_v46  ;;  %v1219_v16 = vpop.f32.mrb[13].mxu0  ;;  %1746 = vmatmul.mubr.bf16.gmra.mrb[8].mxu1 %v1271_v12 }
 0x151   : > { %v1246_v19 = vmul.f32 %v1912_v11, %v1219_v16  ;;  %v1720_v20 = vpop.f32.mrb[14].mxu0 }
 0x152   : > { %v1249_v0 = vmul.f32 %v1914_v51, %v1720_v20  ;;  %v1222_v23 = vpop.f32.mrb[15].mxu0 }
 0x153   : > { %v1247_v25 = vmul.f32 %v1916_v4, %v1222_v23 }
 0x154   : > { %v1273_v26 = vpack.c.bf16 %v1249_v0, %v1248_v58 }
 0x155   : > { %v1272_v55 = vpack.c.bf16 %v1247_v25, %v1246_v19 }
 0x157   : > { %1749 = vmatprep.mubr.bf16.mxu1 %v1272_v55 }
 0x158   : > { %1750 = vmatmul.mubr.bf16.gmra.mrb[12].mxu1 %v1273_v26 }
 0x213   : > { %v1739_v27 = vpop.f32.mrb[0].mxu1 }
 0x214   : > { %v1356_v13 = vpop.f32.mrb[1].mxu1  ;;  %1437 = vst [vmem:[%s2395_s12 + $0x10] sm:$0xff] %v1739_v27 }
 0x215   : > { %v1740_v14 = vpop.f32.mrb[2].mxu1  ;;  %1435 = vst [vmem:[%s2395_s12] sm:$0xff] %v1356_v13 }
 0x216   : > { %v1359_v7 = vpop.f32.mrb[3].mxu1  ;;  %1438 = vst [vmem:[%s2395_s12 + $0x18] sm:$0xff] %v1740_v14 }
 0x217   : > { %1436 = vst [vmem:[%s2395_s12 + $0x8] sm:$0xff] %v1359_v7 }
 0x21b   : > { %v1743_v48 = vpop.f32.mrb[4].mxu1 }
 0x21c   : > { %v1372_v60 = vpop.f32.mrb[5].mxu1  ;;  %1441 = vst [vmem:[%s2395_s12 + $0x30] sm:$0xff] %v1743_v48 }
 0x21d   : > { %v1744_v29 = vpop.f32.mrb[6].mxu1  ;;  %1439 = vst [vmem:[%s2395_s12 + $0x20] sm:$0xff] %v1372_v60 }
 0x21e   : > { %v1375_v5 = vpop.f32.mrb[7].mxu1  ;;  %1442 = vst [vmem:[%s2395_s12 + $0x38] sm:$0xff] %v1744_v29 }
 0x21f   : > { %1440 = vst [vmem:[%s2395_s12 + $0x28] sm:$0xff] %v1375_v5 }
 0x223   : > { %v1747_v28 = vpop.f32.mrb[8].mxu1 }
 0x224   : > { %v1388_v42 = vpop.f32.mrb[9].mxu1  ;;  %1445 = vst [vmem:[%s2395_s12 + $0x50] sm:$0xff] %v1747_v28 }
 0x225   : > { %v1748_v53 = vpop.f32.mrb[10].mxu1  ;;  %1443 = vst [vmem:[%s2395_s12 + $0x40] sm:$0xff] %v1388_v42 }
 0x226   : > { %v1391_v32 = vpop.f32.mrb[11].mxu1  ;;  %1446 = vst [vmem:[%s2395_s12 + $0x58] sm:$0xff] %v1748_v53 }
 0x227   : > { %1444 = vst [vmem:[%s2395_s12 + $0x48] sm:$0xff] %v1391_v32 }
 0x22b   : > { %v1751_v21 = vpop.f32.mrb[12].mxu1 }
 0x22c   : > { %v1404_v33 = vpop.f32.mrb[13].mxu1  ;;  %1449 = vst [vmem:[%s2395_s12 + $0x70] sm:$0xff] %v1751_v21 }
 0x22d   : > { %v1752_v1 = vpop.f32.mrb[14].mxu1  ;;  %1447 = vst [vmem:[%s2395_s12 + $0x60] sm:$0xff] %v1404_v33 }
 0x22e   : > { %v1407_v10 = vpop.f32.mrb[15].mxu1  ;;  %1450 = vst [vmem:[%s2395_s12 + $0x78] sm:$0xff] %v1752_v1 }
 0x22f   : > { %1448 = vst [vmem:[%s2395_s12 + $0x68] sm:$0xff] %v1407_v10 }
 0x230 PF: > { %s22_s28 = sadd.s32 1, %s1953_s28   ;;  %s2429_s26 = smov %s1949_s27 }
 0x231   : > { %p19_p10 = scmp.ge.s32.totalorder %s22_s28, 6   ;;  %s2430_s27 = smov %s2432_s0 }
 0x233   :  { %21 = sbr.rel (!%p19_p10) target bundleno = 17 (0x11), region = 88 }

</bundles_post_ra>
